<compile_context>
chip_gen: v7x
topology: tpu7x:2x2x1
jax: 0.10.0
libtpu: 0.0.40
codegen_flags: <defaults>
</compile_context>

<pallas_src>
import jax
import jax.numpy as jnp
from jax import lax
from jax.experimental import pallas as pl
from jax.experimental.pallas import tpu as pltpu


def _decoder_kernel(xs_ref, w1_ref, b1_ref, w2_ref, b2_ref, o_ref):
    """One batch element per grid step: conv1 -> ReLU -> conv2 (one MXU push per layer).

    xs_ref: (1, L, K*Cin)    im2col'd input (taps folded into the contraction axis)
    w1_ref: (K*Cin, dim)     folded conv1 weight
    b1_ref: (1, dim)
    w2_ref: (K*dim, Cout_p)  folded conv2 weight, Cout zero-padded to a 128 multiple
    b2_ref: (1, Cout_p)
    o_ref:  (1, L, Cout_p)   lane-dense output block
    """
    L = xs_ref.shape[1]
    dim = w1_ref.shape[1]
    K = w2_ref.shape[0] // dim          # static: K*dim / dim
    pad = K // 2

    # ---- conv1: single matmul, contraction = K*Cin ----
    h = jnp.dot(xs_ref[0], w1_ref[...], preferred_element_type=jnp.float32)
    h = jnp.maximum(h + b1_ref[...], 0.0)                       # (L, dim), f32 bias+ReLU

    # ---- conv2: zero boundary as values (no scratch store/load round trip), fold the
    #      K taps into the lane/contraction axis, single matmul (contraction = K*dim) ----
    zrow = jnp.zeros((pad, dim), jnp.float32)
    hp = jnp.concatenate([zrow, h, zrow], axis=0)               # (L + 2*pad, dim)
    hs = jnp.concatenate([hp[k:k + L, :] for k in range(K)], axis=-1)   # (L, K*dim)
    y = jnp.dot(hs.astype(w2_ref.dtype), w2_ref[...],
                preferred_element_type=jnp.float32)
    o_ref[0] = (y + b2_ref[...]).astype(o_ref.dtype)


def convnet_decoder(x, w1, b1, w2, b2, *, use_bf16=False):
    """x: (B, L, C_in) -> (B, L, C_out).  Matches PyTorch ConvNetDecoder.forward.

    w1: (K, C_in, dim), w2: (K, dim, C_out); b1: (dim,), b2: (C_out,).
    """
    B, L, Cin = x.shape
    K, _, dim = w1.shape
    Cout = w2.shape[2]
    # PyTorch Conv1d(padding=K//2) only keeps length L for odd K.
    assert K % 2 == 1, "even kernel_size changes PyTorch 'same' output length"
    pad = K // 2

    # im2col of the zero-padded input in the wrapper: conv1 becomes one matmul.
    x_pad = jnp.pad(x, ((0, 0), (pad, pad), (0, 0)))
    xs = jnp.concatenate([x_pad[:, k:k + L, :] for k in range(K)], axis=-1)  # (B, L, K*Cin)

    # Fold weights to 2-D; zero-pad Cout to a multiple of 128 for lane-dense stores.
    Cout_p = ((Cout + 127) // 128) * 128
    w1f = w1.reshape(K * Cin, dim)
    w2f = jnp.pad(w2, ((0, 0), (0, 0), (0, Cout_p - Cout))).reshape(K * dim, Cout_p)
    b1r = b1.reshape(1, dim)
    b2p = jnp.pad(b2, (0, Cout_p - Cout)).reshape(1, Cout_p)

    if use_bf16:  # bf16 MXU inputs (v6e/v7x fast path); accumulation stays f32 in-kernel.
        xs = xs.astype(jnp.bfloat16)
        w1f = w1f.astype(jnp.bfloat16)
        w2f = w2f.astype(jnp.bfloat16)

    # NOTE: for long sequences, add an L-tile grid axis with a 2*pad halo; at these sizes
    # one batch element per step already fits comfortably in VMEM on every generation.
    out = pl.pallas_call(
        _decoder_kernel,
        out_shape=jax.ShapeDtypeStruct((B, L, Cout_p), x.dtype),
        grid_spec=pltpu.PrefetchScalarGridSpec(
            num_scalar_prefetch=0,
            grid=(B,),                                           # one batch element / step
            in_specs=[
                pl.BlockSpec((1, L, K * Cin), lambda b: (b, 0, 0)),
                pl.BlockSpec((K * Cin, dim), lambda b: (0, 0)),  # constant block index ->
                pl.BlockSpec((1, dim), lambda b: (0, 0)),        # weights DMA'd once,
                pl.BlockSpec((K * dim, Cout_p), lambda b: (0, 0)),  # resident across steps
                pl.BlockSpec((1, Cout_p), lambda b: (0, 0)),
            ],
            out_specs=pl.BlockSpec((1, L, Cout_p), lambda b: (b, 0, 0)),
        ),
        compiler_params=pltpu.CompilerParams(
            dimension_semantics=("parallel",),     # batch axis shards across v7x's 2 TCs
            vmem_limit_bytes=32 * 1024 * 1024,
        ),
    )(xs, w1f, b1r, w2f, b2p)
    return out[:, :, :Cout]


def _reference(x, w1, b1, w2, b2):
    """Pure-JAX reference replicating the PyTorch forward (NCW convs + transposes)."""
    K = w1.shape[0]
    pad = K // 2
    # PyTorch Conv1d weight layout is (C_out, C_in, K) = transpose of our (K, C_in, C_out)
    w1_t = jnp.transpose(w1, (2, 1, 0))
    w2_t = jnp.transpose(w2, (2, 1, 0))
    xt = x.transpose(0, 2, 1)                                    # (B, C_in, L)
    dn = lax.conv_dimension_numbers(xt.shape, w1_t.shape, ("NCH", "OIH", "NCH"))
    h = lax.conv_general_dilated(xt, w1_t, (1,), [(pad, pad)], dimension_numbers=dn)
    h = jax.nn.relu(h + b1[None, :, None])
    dn2 = lax.conv_dimension_numbers(h.shape, w2_t.shape, ("NCH", "OIH", "NCH"))
    y = lax.conv_general_dilated(h, w2_t, (1,), [(pad, pad)], dimension_numbers=dn2)
    y = y + b2[None, :, None]
    return y.transpose(0, 2, 1)                                  # (B, L, C_out)


if __name__ == "__main__":
    # Module defaults kernel_size=5, dim=128; small decoder: in=4 -> out=8, B=2, L=16.
    B, L, C_in, C_out, DIM, K = 2, 16, 4, 8, 128, 5

    key = jax.random.PRNGKey(0)
    k_x, k_w1, k_b1, k_w2, k_b2 = jax.random.split(key, 5)

    x = jax.random.normal(k_x, (B, L, C_in), dtype=jnp.float32)
    # Parameters initialized deterministically in-script (layout (K, C_in, C_out)).
    w1 = jax.random.normal(k_w1, (K, C_in, DIM), dtype=jnp.float32) * 0.1
    b1 = jax.random.normal(k_b1, (DIM,), dtype=jnp.float32) * 0.1
    w2 = jax.random.normal(k_w2, (K, DIM, C_out), dtype=jnp.float32) * 0.1
    b2 = jax.random.normal(k_b2, (C_out,), dtype=jnp.float32) * 0.1

    ref = _reference(x, w1, b1, w2, b2)

    # Exact (f32 MXU) path.
    out = jax.block_until_ready(convnet_decoder(x, w1, b1, w2, b2))
    assert out.shape == (B, L, C_out), out.shape
    assert jnp.allclose(out, ref, atol=1e-4, rtol=1e-4), float(jnp.abs(out - ref).max())

    # bf16 MXU fast path (v6e/v7x): f32 accumulation, looser tolerance vs the f32 reference.
    out_bf16 = jax.block_until_ready(convnet_decoder(x, w1, b1, w2, b2, use_bf16=True))
    assert jnp.allclose(out_bf16, ref, atol=5e-2, rtol=5e-2), \
        float(jnp.abs(out_bf16 - ref).max())

    print("KERNEL_OK")
</pallas_src>

<mosaic_0001>
module attributes {stable_mosaic.version = 11 : i64} {
  func.func @_decoder_kernel(%arg0: i32, %arg1: memref<1x16x20xf32, #tpu.memory_space<vmem>>, %arg2: memref<20x128xf32, #tpu.memory_space<vmem>>, %arg3: memref<1x128xf32, #tpu.memory_space<vmem>>, %arg4: memref<640x128xf32, #tpu.memory_space<vmem>>, %arg5: memref<1x128xf32, #tpu.memory_space<vmem>>, %arg6: memref<1x16x128xf32, #tpu.memory_space<vmem>>) attributes {dimension_semantics = [#tpu.dimension_semantics<parallel>], iteration_bounds = array<i64: 2>, scalar_prefetch = 0 : i64, scratch_operands = 0 : i64, tpu.core_type = #tpu.core_type<tc>, window_params = [{transform_indices = @transform_0, window_bounds = array<i64: 1, 16, 20>}, {pipeline_mode = #tpu.pipeline_mode<synchronous>, transform_indices = @transform_1, window_bounds = array<i64: 20, 128>}, {pipeline_mode = #tpu.pipeline_mode<synchronous>, transform_indices = @transform_2, window_bounds = array<i64: 1, 128>}, {pipeline_mode = #tpu.pipeline_mode<synchronous>, transform_indices = @transform_3, window_bounds = array<i64: 640, 128>}, {pipeline_mode = #tpu.pipeline_mode<synchronous>, transform_indices = @transform_4, window_bounds = array<i64: 1, 128>}, {transform_indices = @transform_5, window_bounds = array<i64: 1, 16, 128>}]} {
    %c0 = arith.constant 0 : index
    %c0_0 = arith.constant 0 : index
    %c0_1 = arith.constant 0 : index
    %0 = vector.load %arg1[%c0, %c0_0, %c0_1] : memref<1x16x20xf32, #tpu.memory_space<vmem>>, vector<1x16x20xf32>
    %1 = vector.shape_cast %0 : vector<1x16x20xf32> to vector<16x20xf32>
    %c0_2 = arith.constant 0 : index
    %c0_3 = arith.constant 0 : index
    %2 = vector.load %arg2[%c0_2, %c0_3] : memref<20x128xf32, #tpu.memory_space<vmem>>, vector<20x128xf32>
    %cst = arith.constant dense<0.000000e+00> : vector<16x128xf32>
    %3 = tpu.matmul %1, %2, %cst {dimension_numbers = #tpu.dot_dimension_numbers<[1], [0], [0], [1], [0, 0, 1, 1], [], []>} : vector<16x20xf32>, vector<20x128xf32>, vector<16x128xf32> -> vector<16x128xf32>
    %c0_4 = arith.constant 0 : index
    %c0_5 = arith.constant 0 : index
    %4 = vector.load %arg3[%c0_4, %c0_5] : memref<1x128xf32, #tpu.memory_space<vmem>>, vector<1x128xf32>
    %5 = vector.broadcast %4 : vector<1x128xf32> to vector<16x128xf32>
    %6 = arith.addf %3, %5 : vector<16x128xf32>
    %cst_6 = arith.constant 0.000000e+00 : f32
    %7 = vector.broadcast %cst_6 : f32 to vector<16x128xf32>
    %8 = arith.maximumf %6, %7 : vector<16x128xf32>
    %cst_7 = arith.constant 0.000000e+00 : f32
    %9 = vector.broadcast %cst_7 : f32 to vector<2x128xf32>
    %10 = tpu.concatenate %9, %8, %9 in 0 : vector<2x128xf32>, vector<16x128xf32>, vector<2x128xf32> -> vector<20x128xf32>
    %11 = vector.extract_strided_slice %10 {offsets = [0, 0], sizes = [16, 128], strides = [1, 1]} : vector<20x128xf32> to vector<16x128xf32>
    %12 = vector.extract_strided_slice %10 {offsets = [1, 0], sizes = [16, 128], strides = [1, 1]} : vector<20x128xf32> to vector<16x128xf32>
    %13 = vector.extract_strided_slice %10 {offsets = [2, 0], sizes = [16, 128], strides = [1, 1]} : vector<20x128xf32> to vector<16x128xf32>
    %14 = vector.extract_strided_slice %10 {offsets = [3, 0], sizes = [16, 128], strides = [1, 1]} : vector<20x128xf32> to vector<16x128xf32>
    %15 = vector.extract_strided_slice %10 {offsets = [4, 0], sizes = [16, 128], strides = [1, 1]} : vector<20x128xf32> to vector<16x128xf32>
    %16 = tpu.concatenate %11, %12, %13, %14, %15 in 1 : vector<16x128xf32>, vector<16x128xf32>, vector<16x128xf32>, vector<16x128xf32>, vector<16x128xf32> -> vector<16x640xf32>
    %c0_8 = arith.constant 0 : index
    %c0_9 = arith.constant 0 : index
    %17 = vector.load %arg4[%c0_8, %c0_9] : memref<640x128xf32, #tpu.memory_space<vmem>>, vector<640x128xf32>
    %cst_10 = arith.constant dense<0.000000e+00> : vector<16x128xf32>
    %18 = tpu.matmul %16, %17, %cst_10 {dimension_numbers = #tpu.dot_dimension_numbers<[1], [0], [0], [1], [0, 0, 1, 1], [], []>} : vector<16x640xf32>, vector<640x128xf32>, vector<16x128xf32> -> vector<16x128xf32>
    %c0_11 = arith.constant 0 : index
    %c0_12 = arith.constant 0 : index
    %19 = vector.load %arg5[%c0_11, %c0_12] : memref<1x128xf32, #tpu.memory_space<vmem>>, vector<1x128xf32>
    %20 = vector.broadcast %19 : vector<1x128xf32> to vector<16x128xf32>
    %21 = arith.addf %18, %20 : vector<16x128xf32>
    %c0_13 = arith.constant 0 : index
    %c0_14 = arith.constant 0 : index
    %c0_15 = arith.constant 0 : index
    %22 = vector.load %arg6[%c0_13, %c0_14, %c0_15] : memref<1x16x128xf32, #tpu.memory_space<vmem>>, vector<1x16x128xf32>
    %23 = vector.shape_cast %22 : vector<1x16x128xf32> to vector<16x128xf32>
    %24 = vector.shape_cast %21 : vector<16x128xf32> to vector<1x16x128xf32>
    tpu.vector_store %arg6[%c0_13, %c0_14, %c0_15], %24 {strides = array<i32>} : memref<1x16x128xf32, #tpu.memory_space<vmem>>, vector<1x16x128xf32>,
    return
  }
  func.func @transform_0(%arg0: i32) -> (i32, i32, i32) {
    %c0_i32 = arith.constant 0 : i32
    %c0_i32_0 = arith.constant 0 : i32
    %c0_i32_1 = arith.constant 0 : i32
    return %arg0, %c0_i32, %c0_i32_0 : i32, i32, i32
  }
  func.func @transform_1(%arg0: i32) -> (i32, i32) {
    %c0_i32 = arith.constant 0 : i32
    %c0_i32_0 = arith.constant 0 : i32
    %c0_i32_1 = arith.constant 0 : i32
    return %c0_i32, %c0_i32_0 : i32, i32
  }
  func.func @transform_2(%arg0: i32) -> (i32, i32) {
    %c0_i32 = arith.constant 0 : i32
    %c0_i32_0 = arith.constant 0 : i32
    %c0_i32_1 = arith.constant 0 : i32
    return %c0_i32, %c0_i32_0 : i32, i32
  }
  func.func @transform_3(%arg0: i32) -> (i32, i32) {
    %c0_i32 = arith.constant 0 : i32
    %c0_i32_0 = arith.constant 0 : i32
    %c0_i32_1 = arith.constant 0 : i32
    return %c0_i32, %c0_i32_0 : i32, i32
  }
  func.func @transform_4(%arg0: i32) -> (i32, i32) {
    %c0_i32 = arith.constant 0 : i32
    %c0_i32_0 = arith.constant 0 : i32
    %c0_i32_1 = arith.constant 0 : i32
    return %c0_i32, %c0_i32_0 : i32, i32
  }
  func.func @transform_5(%arg0: i32) -> (i32, i32, i32) {
    %c0_i32 = arith.constant 0 : i32
    %c0_i32_0 = arith.constant 0 : i32
    %c0_i32_1 = arith.constant 0 : i32
    return %arg0, %c0_i32, %c0_i32_0 : i32, i32, i32
  }
}

</mosaic_0001>

<bundles_post_ra>
// kernel: tpu_custom_call.1
= control target key start
LH: loop header
LB: loop body
LE: loop exit
PB: predicated region body
PF: predicated region fallthrough
CT: control target
= control target key end

     0   :  { %10 = vsyncpa [#allocation3], 0  ;;  %s1648_s0 = inlined_call_operand.hbm [shape: f32[2,16,20], index: 0, kind: input, shape index: {}]   ;;  %s1649_s1 = inlined_call_operand.hbm [shape: f32[20,128], index: 1, kind: input, shape index: {}]   ;;  %s1650_s2 = inlined_call_operand.vmem [shape: f32[1,128], index: 2, kind: input, shape index: {}]   ;;  %s1651_s3 = inlined_call_operand.hbm [shape: f32[640,128], index: 3, kind: input, shape index: {}]   ;;  %s1652_s4 = inlined_call_operand.vmem [shape: f32[1,128], index: 4, kind: input, shape index: {}]   ;;  %s1653_s5 = inlined_call_operand.hbm [shape: f32[2,16,128], index: 5, kind: output, shape index: {}]  }
   0x1   :  { %12 = vsyncpa [#allocation3 + $0x1], 0 }
   0x2   :  { %13 = vsyncpa [#allocation6], 0 }
   0x3   :  { %14 = vsyncpa [#allocation4], 0 }
   0x4   :  { %16 = vsyncpa [#allocation4 + $0x1], 0  ;;  %s1373_s18 = smov 0   ;;  %s1375_s19 = smov 0  }
   0x5   :  { %s1377_s20 = smov 0   ;;  %s1379_s21 = smov 0  }
   0x6 LB: > { %s1394_s22 = sadd.s32 4294967295, %s1333_s21   ;;  %s836_s23 = sadd.s32 4294967294, %s1333_s21   ;;  %s1333_s21 = sphi %s1379_s21, %s1675_s21   ;;  %s1329_s20 = sphi %s1377_s20, %s1674_s20   ;;  %s1325_s19 = sphi %s1375_s19, %s1673_s19   ;;  %s1321_s18 = sphi %s1373_s18, %s1672_s18  }
   0x7   : > { %p42_p0 = scmp.ne.s32.totalorder %s1325_s19, %s1321_s18  ;;  %p1654_p1 = scmp.eq.s32.totalorder %s1394_s22, 0 }
   0x8   : > { %p156_p3 = scmp.eq.s32.totalorder %s836_s23, 1  ;;  %p837_p5 = scmp.ge.s32.totalorder %s1333_s21, 1 }
   0x9   : > { %p1403_p4 = por %p1654_p1, %p42_p0  ;;  %p163_p7 = scmp.lt.s32.totalorder %s1333_s21, 3 }
   0xa   : > { %p1408_p6 = por %p156_p3, %p42_p0  ;;  %s1335_s27 = smov [#allocation5]  }
   0xb   : > { %s1657_s24 = scalar_select %p1403_p4, 1, 0 }
   0xc   : > { %s1658_s25 = scalar_select %p1408_p6, 1, 0 }
   0xd   : > { %p1413_p8 = pnand %p837_p5, %p163_p7  ;;  %s175_s28 = sshll.u32 %s1335_s27, 4  ;;  %s1417_s28 = int_to_ptr.vmem [resolvable:$true] %s175_s28 }
   0xe   : > { %s1336_s30 = smov [#allocation7]   ;;  %s1177_s9 = scalar_lea.hbm %s1649_s1, 384 }
   0xf   : > { %p1118_p9 = pneg %p1413_p8  ;;  %s191_s6 = sshll.u32 %s1336_s30, 4  ;;  %s1428_s6 = int_to_ptr.vmem [resolvable:$true] %s191_s6 }
  0x10   : > { %p1178_p12 = scmp.ne.s32.totalorder %s1649_s1, %s1177_s9  ;;  %p1184_p5 = scmp.lt.u32.totalorder %s1177_s9, %s1649_s1 }
  0x11   : > { %p1424_p11 = pnand %p1118_p9, %p1654_p1 }
  0x13   : > { %p1179_p13 = pneg %p1424_p11 }
  0x15   : > { %p1180_p0 = pnand %p1179_p13, %p1178_p12 }
  0x17   : > { %p1181_p3 = pneg %p1180_p0 }
  0x19   : > { %p1186_p7 = pnand %p1184_p5, %p1181_p3 }
  0x1b   : > { %1189 = shalt.err (!%p1186_p7)
}
  0x1c   : > { %s1190_s14 = scalar_lea.vmem %s1417_s28, 384  ;;  %p1198_p2 = scmp.lt.s32.totalorder %s1417_s28, %s1417_s28 }
  0x1d   : > { %p1191_p9 = scmp.ne.s32.totalorder %s1417_s28, %s1190_s14  ;;  %p1199_p12 = scmp.lt.s32.totalorder %s1190_s14, %s1190_s14 }
  0x1f   : > { %p1193_p10 = pnand %p1191_p9, %p1179_p13  ;;  %p1200_p0 = por %p1199_p12, %p1198_p2 }
  0x21   : > { %p1194_p1 = pneg %p1193_p10 }
  0x23   : > { %p1201_p6 = pnand %p1200_p0, %p1194_p1 }
  0x25   : > { %1204 = shalt.err (!%p1201_p6)
}
  0x26   : > { %s1337_s15 = smov 128   ;;  %s1338_s16 = smov 8  }
  0x27   : > { %1121 = dma.hbm_to_vmem [thread:$0]  (!%p1424_p11), %s1649_s1, 384, %s1417_s28, [#allocation6], %s1337_s15, %s1337_s15, %s1338_s16  }
  0x28   : > { %s1205_s7 = scalar_lea.hbm %s1651_s3, 10240 }
  0x29   : > { %p1206_p1 = scmp.ne.s32.totalorder %s1651_s3, %s1205_s7  ;;  %p1212_p10 = scmp.lt.u32.totalorder %s1205_s7, %s1651_s3 }
  0x2b   : > { %p1208_p2 = pnand %p1206_p1, %p1179_p13 }
  0x2d   : > { %p1209_p6 = pneg %p1208_p2 }
  0x2f   : > { %p1214_p3 = pnand %p1212_p10, %p1209_p6 }
  0x31   : > { %1217 = shalt.err (!%p1214_p3)
}
  0x32   : > { %s1218_s28 = scalar_lea.vmem %s1428_s6, 10240  ;;  %p1226_p12 = scmp.lt.s32.totalorder %s1428_s6, %s1428_s6 }
  0x33   : > { %p1219_p5 = scmp.ne.s32.totalorder %s1428_s6, %s1218_s28  ;;  %p1227_p0 = scmp.lt.s32.totalorder %s1218_s28, %s1218_s28 }
  0x35   : > { %p1221_p7 = pnand %p1219_p5, %p1179_p13  ;;  %p1228_p1 = por %p1227_p0, %p1226_p12 }
  0x37   : > { %p1222_p9 = pneg %p1221_p7 }
  0x39   : > { %p1229_p2 = pnand %p1228_p1, %p1222_p9 }
  0x3b   : > { %1232 = shalt.err (!%p1229_p2)
}
  0x3c   : > { %1124 = dma.hbm_to_vmem [thread:$0]  (!%p1424_p11), %s1651_s3, 10240, %s1428_s6, [#allocation6], %s1337_s15, %s1337_s15, %s1338_s16  }
  0x3d   : > { %s1489_s29 = sadd.s32 1, %s1333_s21   ;;  %s29_s14 = sadd.s32 1, %s1329_s20 }
  0x3e   : > { %s26_s17 = ssub.s32 %s1333_s21, %s1489_s29  ;;  %p36_p13 = scmp.ne.s32.totalorder %s1329_s20, %s1325_s19 }
  0x3f   : > { %p27_p6 = scmp.eq.s32.totalorder %s26_s17, 0  ;;  %p37_p10 = scmp.eq.s32.totalorder %s1333_s21, 0 }
  0x40   : > { %p1661_p3 = scmp.eq.s32.totalorder %s1394_s22, 1  ;;  %p1135_p7 = scmp.lt.s32.totalorder %s1333_s21, 2 }
  0x41   : > { %s1505_s27 = scalar_select %p27_p6, %s1329_s20, %s29_s14  }
  0x42   : > { %p1499_p5 = por %p1661_p3, %p36_p13  ;;  %p38_p9 = por %p37_p10, %p36_p13 }
  0x43   : > { %s208_s30 = sand.u32 1, %s1329_s20   ;;  %s861_s6 = sshll.u32 %s1333_s21, 8 }
  0x44   : > { %s1662_s23 = scalar_select %p1499_p5, 1, 0 }
  0x45   : > { %s841_s7 = sshll.u32 %s208_s30, 4  ;;  %s1512_s10 = scalar_lea.hbm %s1648_s0, %s861_s6 }
  0x46   : > { %s212_s11 = scalar_lea.vmem [#allocation2], %s841_s7  ;;  %p1516_p11 = pnand %p1135_p7, %p38_p9 }
  0x47   : > { %s219_s28 = sshll.u32 %s212_s11, 4  ;;  %s1520_s13 = scalar_lea.sflag [#allocation3], %s208_s30  ;;  %s1514_s28 = int_to_ptr.vmem [resolvable:$true] %s219_s28 }
  0x48   : > { %s1233_s14 = scalar_lea.hbm %s1512_s10, 256  ;;  %p1235_p0 = pneg %p1516_p11 }
  0x49   : > { %p1234_p12 = scmp.ne.s32.totalorder %s1512_s10, %s1233_s14  ;;  %s1238_s6 = scalar_lea.hbm %s1648_s0, 512 }
  0x4a   : > { %p1239_p13 = scmp.lt.u32.totalorder %s1512_s10, %s1648_s0  ;;  %p1240_p6 = scmp.lt.u32.totalorder %s1238_s6, %s1233_s14 }
  0x4b   : > { %p1236_p1 = pnand %p1235_p0, %p1234_p12  ;;  %p1242_p3 = scmp.lt.u32.totalorder %s1233_s14, %s1512_s10 }
  0x4c   : > { %p1241_p10 = por %p1240_p6, %p1239_p13 }
  0x4d   : > { %p1237_p2 = pneg %p1236_p1 }
  0x4e   : > { %p1243_p7 = por %p1242_p3, %p1241_p10 }
  0x50   : > { %p1244_p9 = pnand %p1243_p7, %p1237_p2 }
  0x52   : > { %1247 = shalt.err (!%p1244_p9)
}
  0x53   : > { %s1248_s30 = scalar_lea.vmem %s1514_s28, 256  ;;  %s1339_s11 = smov [#allocation2]  }
  0x54   : > { %p1249_p12 = scmp.ne.s32.totalorder %s1514_s28, %s1248_s30  ;;  %s1253_s17 = sshll.u32 %s1339_s11, 4  ;;  %s1254_s17 = int_to_ptr.vmem [resolvable:$false] %s1253_s17 }
  0x55   : > { %s1255_s7 = scalar_lea.vmem %s1254_s17, 512  ;;  %p1256_p4 = scmp.lt.s32.totalorder %s1514_s28, %s1254_s17 }
  0x56   : > { %p1251_p1 = pnand %p1249_p12, %p1235_p0  ;;  %p1257_p13 = scmp.lt.s32.totalorder %s1255_s7, %s1248_s30 }
  0x58   : > { %p1252_p5 = pneg %p1251_p1  ;;  %p1258_p6 = por %p1257_p13, %p1256_p4 }
  0x5a   : > { %p1259_p10 = pnand %p1258_p6, %p1252_p5 }
  0x5c   : > { %1262 = shalt.err (!%p1259_p10)
}
  0x5d   : > { %1128 = dma.hbm_to_vmem [thread:$0]  (!%p1516_p11), %s1512_s10, 256, %s1514_s28, %s1520_s13, %s1337_s15, %s1337_s15, %s1338_s16  }
  0x5e   : > { %231 = sbr.rel (%p1413_p8) target bundleno = 600 (0x258), region = 40  ;;  %s1554_s14 = sand.u32 (!%p1413_p8), 1, %s1325_s19  }
  0x5f   : > { %s845_s6 = sshll.u32 (!%p1413_p8), %s1554_s14, 4  ;;  %s234_s8 = scalar_lea.sflag (!%p1413_p8), [#allocation3], %s1554_s14 }
  0x60   : > { %s237_s12 = scalar_lea.vmem (!%p1413_p8), [#allocation2], %s845_s6  ;;  %p1664_p4 = scmp.ne.s32.totalorder (!%p1413_p8), %s1657_s24, 0 }
  0x65   : > { %1308 = dma.done.wait (%p1664_p4), %s234_s8, 256  }
  0x66   : > { %1310 = vsyncadd (%p1664_p4), %s234_s8, 4294967040  ;;  %p1665_p5 = scmp.eq.s32.totalorder %s1394_s22, 0 }
  0x68   : > { %1312 = dma.done.wait (%p1665_p5), [#allocation6], 10624   ;;  %p1666_p8 = pmov %p1665_p5 }
  0x69   : > { %vm284_vm0 = vcmask 162816   ;;  %v274_v0 = vld [vmem:[#allocation5] sm:$0xff]  ;;  %v275_v1 = vld [vmem:[#allocation5 + $0x8] sm:$0xff]  ;;  %v276_v3 = vld [vmem:[#allocation5 + $0x10] sm:$0xf]  ;;  %vm291_vm1 = vcmask 1043456  }
  0x6a   : > { %1314 = vsyncadd (%p1666_p8), [#allocation6], 4294956672  ;;  %v1006_v2 = vpack.c.bf16 %v275_v1, %v274_v0  ;;  %v272_v4 = vld [vmem:[%s237_s12] sm:$0xff]  ;;  %v432_v5 = vld [vmem:[#allocation7 + $0x80] sm:$0xff]  ;;  %vm374_vm2 = vcmask 1041408   ;;  %vm385_vm3 = vcmask 1046528  }
  0x6b   : > { %968 = vmatprep.mubr.msk.f32.mxu0 %vm284_vm0, %v272_v4  ;;  %v433_v6 = vld [vmem:[#allocation7 + $0x88] sm:$0xff]  ;;  %v416_v7 = vld [vmem:[#allocation7] sm:$0xff]  ;;  %v434_v16 = vld [vmem:[#allocation7 + $0x90] sm:$0xff]  ;;  %vm401_vm4 = vcmask 1044480   ;;  %vm393_vm5 = vcmask 1045504   ;;  %s271_s10 = scalar_lea.vmem [#allocation8], %s845_s6 }
  0x6c   : > { %v417_v8 = vld [vmem:[#allocation7 + $0x8] sm:$0xff]  ;;  %1007 = vmatprep.subr.bf16.mxu0 %v1006_v2  ;;  %v1010_v9 = vpack.c.bf16 %v433_v6, %v432_v5  ;;  %v464_v11 = vld [vmem:[#allocation7 + $0x180] sm:$0xff]  ;;  %v435_v17 = vld [vmem:[#allocation7 + $0x98] sm:$0xff]  ;;  %s744_s28 = sshll.u32 %s271_s10, 4  ;;  %s862_s13 = sshll.u32 %s1394_s22, 8  ;;  %s1599_s28 = int_to_ptr.vmem [resolvable:$true] %s744_s28 }
  0x6d   : > { %v1012_v10 = vpack.c.bf16 %v417_v8, %v416_v7  ;;  %v465_v12 = vld [vmem:[#allocation7 + $0x188] sm:$0xff]  ;;  %v448_v13 = vld [vmem:[#allocation7 + $0x100] sm:$0xff]  ;;  %1009 = vmatpush3.bf16.msra.mxu0 %v1006_v2  ;;  %v1014_v19 = vpack.c.bf16 %v435_v17, %v434_v16  ;;  %v418_v20 = vld [vmem:[#allocation7 + $0x10] sm:$0xff]  ;;  %s1604_s11 = scalar_lea.hbm %s1653_s5, %s862_s13  ;;  %s731_s17 = scalar_lea.sflag [#allocation4], %s1554_s14 }
  0x6e   : > { %v273_v14 = vld [vmem:[%s237_s12 + $0x8] sm:$0xff]  ;;  %v449_v15 = vld [vmem:[#allocation7 + $0x108] sm:$0xff]  ;;  %966 = vmatprep.subr.msk.mxu0 %vm291_vm1, %v276_v3  ;;  %1011 = vmatprep.subr.bf16.mxu1 %v1010_v9  ;;  %v1042_v18 = vpack.c.bf16 %v465_v12, %v464_v11  ;;  %v419_v21 = vld [vmem:[#allocation7 + $0x18] sm:$0xff]  ;;  %s1263_s7 = scalar_lea.vmem %s1599_s28, 256  ;;  %p1669_p0 = scmp.ne.s32.totalorder %s1662_s23, 0 }
  0x6f   : > { %v466_v22 = vld [vmem:[#allocation7 + $0x190] sm:$0xff]  ;;  %1013 = vmatpush3.bf16.msra.mxu1 %v1012_v10  ;;  %v1044_v23 = vpack.c.bf16 %v449_v15, %v448_v13  ;;  %v1016_v24 = vpack.c.bf16 %v419_v21, %v418_v20  ;;  %v467_v25 = vld [vmem:[#allocation7 + $0x198] sm:$0xff]  ;;  %v436_v29 = vld [vmem:[#allocation7 + $0xa0] sm:$0xff]  ;;  %p1264_p11 = scmp.ne.s32.totalorder %s1599_s28, %s1263_s7  ;;  %s1340_s22 = smov [#allocation8]  }
  0x70   : > { %v450_v26 = vld [vmem:[#allocation7 + $0x110] sm:$0xff]  ;;  %v451_v27 = vld [vmem:[#allocation7 + $0x118] sm:$0xff]  ;;  %1015 = vmatprep.subr.bf16.mxu1 %v1014_v19  ;;  %v1046_v28 = vpack.c.bf16 %v467_v25, %v466_v22  ;;  %v437_v30 = vld [vmem:[#allocation7 + $0xa8] sm:$0xff]  ;;  %s1267_s6 = sshll.u32 %s1340_s22, 4  ;;  %s1268_s6 = int_to_ptr.vmem [resolvable:$false] %s1267_s6 }
  0x71   : > { %v420_v31 = vld [vmem:[#allocation7 + $0x20] sm:$0xff]  ;;  %967 = vmatpush3.msk.msra.mxu0 %vm291_vm1, %v276_v3  ;;  %v1018_v32 = vpack.c.bf16 %v437_v30, %v436_v29  ;;  %v421_v33 = vld [vmem:[#allocation7 + $0x28] sm:$0xff]  ;;  %v438_v36 = vld [vmem:[#allocation7 + $0xb0] sm:$0xff]  ;;  %v1048_v37 = vpack.c.bf16 %v451_v27, %v450_v26  ;;  %p1265_p2 = pnand %p1264_p11, %p1669_p0  ;;  %s1269_s8 = scalar_lea.vmem %s1268_s6, 512 }
  0x72   : > { %v468_v34 = vld [vmem:[#allocation7 + $0x1a0] sm:$0xff]  ;;  %v469_v35 = vld [vmem:[#allocation7 + $0x1a8] sm:$0xff]  ;;  %969 = vmatmul.mubr.msk.f32.vlgmr.msra.gmra.mrb[0].mxu0 %vm284_vm0, %v273_v14  ;;  %1043 = vmatprep.subr.bf16.mxu0 %v1042_v18  ;;  %v1020_v38 = vpack.c.bf16 %v421_v33, %v420_v31  ;;  %v439_v41 = vld [vmem:[#allocation7 + $0xb8] sm:$0xff]  ;;  %p1270_p7 = scmp.lt.s32.totalorder %s1599_s28, %s1268_s6  ;;  %p1271_p9 = scmp.lt.s32.totalorder %s1269_s8, %s1263_s7 }
  0x73   : > { %1045 = vmatpush3.bf16.msra.mxu0 %v1044_v23  ;;  %1017 = vmatpush3.bf16.msra.mxu1 %v1016_v24  ;;  %v452_v39 = vld [vmem:[#allocation7 + $0x120] sm:$0xff]  ;;  %v453_v40 = vld [vmem:[#allocation7 + $0x128] sm:$0xff]  ;;  %v1050_v42 = vpack.c.bf16 %v469_v35, %v468_v34  ;;  %v1022_v43 = vpack.c.bf16 %v439_v41, %v438_v36  ;;  %v422_v44 = vld [vmem:[#allocation7 + $0x30] sm:$0xff]  ;;  %p1266_p3 = pneg %p1265_p2 }
  0x74   : > { %1047 = vmatprep.subr.bf16.mxu0 %v1046_v28  ;;  %1019 = vmatprep.subr.bf16.mxu1 %v1018_v32  ;;  %v423_v45 = vld [vmem:[#allocation7 + $0x38] sm:$0xff]  ;;  %v470_v46 = vld [vmem:[#allocation7 + $0x1b0] sm:$0xff]  ;;  %v440_v48 = vld [vmem:[#allocation7 + $0xc0] sm:$0xff]  ;;  %v1052_v50 = vpack.c.bf16 %v453_v40, %v452_v39  ;;  %p1272_p12 = por %p1271_p9, %p1270_p7 }
  0x75   : > { %v471_v47 = vld [vmem:[#allocation7 + $0x1b8] sm:$0xff]  ;;  %v441_v49 = vld [vmem:[#allocation7 + $0xc8] sm:$0xff]  ;;  %v1024_v51 = vpack.c.bf16 %v423_v45, %v422_v44  ;;  %v454_v52 = vld [vmem:[#allocation7 + $0x130] sm:$0xff] }
  0x76   : > { %v1054_v53 = vpack.c.bf16 %v471_v47, %v470_v46  ;;  %v455_v54 = vld [vmem:[#allocation7 + $0x138] sm:$0xff]  ;;  %v1026_v55 = vpack.c.bf16 %v441_v49, %v440_v48  ;;  %v424_v56 = vld [vmem:[#allocation7 + $0x40] sm:$0xff]  ;;  %v425_v57 = vld [vmem:[#allocation7 + $0x48] sm:$0xff]  ;;  %p1273_p1 = pnand %p1272_p12, %p1266_p3 }
  0x77   : > { %1049 = vmatpush3.bf16.msra.mxu0 %v1048_v37  ;;  %1021 = vmatpush3.bf16.msra.mxu1 %v1020_v38  ;;  %v472_v58 = vld [vmem:[#allocation7 + $0x1c0] sm:$0xff]  ;;  %v473_v59 = vld [vmem:[#allocation7 + $0x1c8] sm:$0xff]  ;;  %v1056_v60 = vpack.c.bf16 %v455_v54, %v454_v52  ;;  %v1028_v61 = vpack.c.bf16 %v425_v57, %v424_v56  ;;  %v442_v2 = vld [vmem:[#allocation7 + $0xd0] sm:$0xff] }
  0x78   : > { %1051 = vmatprep.subr.bf16.mxu0 %v1050_v42  ;;  %1023 = vmatprep.subr.bf16.mxu1 %v1022_v43  ;;  %v1058_v62 = vpack.c.bf16 %v473_v59, %v472_v58  ;;  %v456_v63 = vld [vmem:[#allocation7 + $0x140] sm:$0xff]  ;;  %v457_v0 = vld [vmem:[#allocation7 + $0x148] sm:$0xff]  ;;  %v443_v3 = vld [vmem:[#allocation7 + $0xd8] sm:$0xff] }
  0x79   : > { %v1060_v1 = vpack.c.bf16 %v457_v0, %v456_v63  ;;  %v1030_v4 = vpack.c.bf16 %v443_v3, %v442_v2  ;;  %v426_v5 = vld [vmem:[#allocation7 + $0x50] sm:$0xff]  ;;  %v427_v6 = vld [vmem:[#allocation7 + $0x58] sm:$0xff]  ;;  %v444_v14 = vld [vmem:[#allocation7 + $0xe0] sm:$0xff] }
  0x7a   : > { %v474_v7 = vld [vmem:[#allocation7 + $0x1d0] sm:$0xff]  ;;  %v1032_v8 = vpack.c.bf16 %v427_v6, %v426_v5  ;;  %v475_v9 = vld [vmem:[#allocation7 + $0x1d8] sm:$0xff]  ;;  %v445_v15 = vld [vmem:[#allocation7 + $0xe8] sm:$0xff] }
  0x7b   : > { %1053 = vmatpush3.bf16.msra.mxu0 %v1052_v50  ;;  %1025 = vmatpush3.bf16.msra.mxu1 %v1024_v51  ;;  %v458_v10 = vld [vmem:[#allocation7 + $0x150] sm:$0xff]  ;;  %v459_v11 = vld [vmem:[#allocation7 + $0x158] sm:$0xff]  ;;  %v1062_v12 = vpack.c.bf16 %v475_v9, %v474_v7  ;;  %v1034_v16 = vpack.c.bf16 %v445_v15, %v444_v14  ;;  %v428_v17 = vld [vmem:[#allocation7 + $0x60] sm:$0xff] }
  0x7c   : > { %1055 = vmatprep.subr.bf16.mxu0 %v1054_v53  ;;  %1027 = vmatprep.subr.bf16.mxu1 %v1026_v55  ;;  %v1064_v13 = vpack.c.bf16 %v459_v11, %v458_v10  ;;  %v429_v18 = vld [vmem:[#allocation7 + $0x68] sm:$0xff]  ;;  %v476_v19 = vld [vmem:[#allocation7 + $0x1e0] sm:$0xff]  ;;  %v446_v26 = vld [vmem:[#allocation7 + $0xf0] sm:$0xff] }
  0x7d   : > { %v1036_v20 = vpack.c.bf16 %v429_v18, %v428_v17  ;;  %v477_v21 = vld [vmem:[#allocation7 + $0x1e8] sm:$0xff]  ;;  %v460_v22 = vld [vmem:[#allocation7 + $0x160] sm:$0xff]  ;;  %v447_v27 = vld [vmem:[#allocation7 + $0xf8] sm:$0xff] }
  0x7e   : > { %v461_v23 = vld [vmem:[#allocation7 + $0x168] sm:$0xff]  ;;  %v1066_v24 = vpack.c.bf16 %v477_v21, %v476_v19  ;;  %v1038_v28 = vpack.c.bf16 %v447_v27, %v446_v26  ;;  %v430_v29 = vld [vmem:[#allocation7 + $0x70] sm:$0xff]  ;;  %v431_v30 = vld [vmem:[#allocation7 + $0x78] sm:$0xff] }
  0x7f   : > { %1057 = vmatpush3.bf16.msra.mxu0 %v1056_v60  ;;  %1029 = vmatpush3.bf16.msra.mxu1 %v1028_v61  ;;  %v1068_v25 = vpack.c.bf16 %v461_v23, %v460_v22  ;;  %v478_v31 = vld [vmem:[#allocation7 + $0x1f0] sm:$0xff]  ;;  %v1040_v32 = vpack.c.bf16 %v431_v30, %v430_v29  ;;  %v479_v33 = vld [vmem:[#allocation7 + $0x1f8] sm:$0xff]  ;;  %v480_v38 = vld [vmem:[#allocation7 + $0x200] sm:$0xff] }
  0x80   : > { %1059 = vmatprep.subr.bf16.mxu0 %v1058_v62  ;;  %1031 = vmatprep.subr.bf16.mxu1 %v1030_v4  ;;  %v462_v34 = vld [vmem:[#allocation7 + $0x170] sm:$0xff]  ;;  %v463_v35 = vld [vmem:[#allocation7 + $0x178] sm:$0xff]  ;;  %v1070_v36 = vpack.c.bf16 %v479_v33, %v478_v31  ;;  %v481_v39 = vld [vmem:[#allocation7 + $0x208] sm:$0xff] }
  0x81   : > { %v1072_v37 = vpack.c.bf16 %v463_v35, %v462_v34  ;;  %v1074_v40 = vpack.c.bf16 %v481_v39, %v480_v38  ;;  %v849_v41 = vld [vmem:[%s1650_s2] ss:$0 sm:$0xff]  ;;  %v482_v48 = vld [vmem:[#allocation7 + $0x210] sm:$0xff]  ;;  %v483_v49 = vld [vmem:[#allocation7 + $0x218] sm:$0xff] }
  0x82   : > { %v1078_v53 = vpack.c.bf16 %v483_v49, %v482_v48  ;;  %vm1579_vm6 = vmneg %vm374_vm2  ;;  %v484_v11 = vld [vmem:[#allocation7 + $0x220] sm:$0xff]  ;;  %v487_v17 = vld [vmem:[#allocation7 + $0x238] sm:$0xff] }
  0x83   : > { %1061 = vmatpush3.bf16.msra.mxu0 %v1060_v1  ;;  %1033 = vmatpush3.bf16.msra.mxu1 %v1032_v8  ;;  %v488_v19 = vld [vmem:[#allocation7 + $0x240] sm:$0xff]  ;;  %v490_v22 = vld [vmem:[#allocation7 + $0x250] sm:$0xff]  ;;  %v491_v23 = vld [vmem:[#allocation7 + $0x258] sm:$0xff] }
  0x84   : > { %1063 = vmatprep.subr.bf16.mxu0 %v1062_v12  ;;  %1035 = vmatprep.subr.bf16.mxu1 %v1034_v16  ;;  %v485_v12 = vld [vmem:[#allocation7 + $0x228] sm:$0xff]  ;;  %v486_v16 = vld [vmem:[#allocation7 + $0x230] sm:$0xff]  ;;  %v495_v29 = vld [vmem:[#allocation7 + $0x278] sm:$0xff] }
  0x85   : > { %v1082_v15 = vpack.c.bf16 %v485_v12, %v484_v11  ;;  %v1086_v18 = vpack.c.bf16 %v487_v17, %v486_v16  ;;  %v493_v26 = vld [vmem:[#allocation7 + $0x268] sm:$0xff] }
  0x86   : > { %v853_v33 = vld [vmem:[%s1652_s4] ss:$0 sm:$0xff] }
  0x87   : > { %1065 = vmatpush3.bf16.msra.mxu0 %v1064_v13  ;;  %1037 = vmatpush3.bf16.msra.mxu1 %v1036_v20  ;;  %v489_v20 = vld [vmem:[#allocation7 + $0x248] sm:$0xff] }
  0x88   : > { %1067 = vmatprep.subr.bf16.mxu0 %v1066_v24  ;;  %1039 = vmatprep.subr.bf16.mxu1 %v1038_v28  ;;  %v1090_v21 = vpack.c.bf16 %v489_v20, %v488_v19  ;;  %v1094_v24 = vpack.c.bf16 %v491_v23, %v490_v22  ;;  %v494_v28 = vld [vmem:[#allocation7 + $0x270] sm:$0xff] }
  0x89   : > { %v1102_v30 = vpack.c.bf16 %v495_v29, %v494_v28 }
  0x8b   : > { %1069 = vmatpush3.bf16.msra.mxu0 %v1068_v25  ;;  %1041 = vmatpush3.bf16.msra.mxu1 %v1040_v32  ;;  %v492_v25 = vld [vmem:[#allocation7 + $0x260] sm:$0xff] }
  0x8c   : > { %1071 = vmatprep.subr.bf16.mxu0 %v1070_v36  ;;  %1075 = vmatprep.subr.bf16.mxu1 %v1074_v40  ;;  %v1098_v27 = vpack.c.bf16 %v493_v26, %v492_v25 }
  0x8f   : > { %1073 = vmatpush3.bf16.msra.mxu0 %v1072_v37 }
 0x145   : > { %v970_v42 = vpop.f32.mrb[0].mxu0 }
 0x146   : > { %v367_v43 = vadd.f32 %v970_v42, %v849_v41  ;;  %v361_v44 = vpop.f32.mrb[1].mxu0 }
 0x147   : > { %v362_v45 = vadd.f32 %v849_v41, %v361_v44 }
 0x148   : > { %v371_v46 = vmax.f32 %v367_v43, 0.0 }
 0x149   : > { %v370_v47 = vmax.f32 %v362_v45, 0.0 }
 0x14a   : > { %v376_v50 = vrot.slane %v371_v46, 6 }
 0x14b   : > { %v375_v51 = vrot.slane %v370_v47, 6 }
 0x14c   : > { %v382_v52 = vsel %vm374_vm2, %v376_v50, 0.0 }
 0x14d   : > { %v412_v54 = vrot.slane %v382_v52, 4  ;;  %v377_v55 = vsel %vm374_vm2, %v375_v51, %v376_v50  ;;  %v381_v56 = vsel %vm374_vm2, 0.0, %v375_v51  ;;  %v389_v57 = vrot.slane %v382_v52, 1 }
 0x14e   : > { %v386_v58 = vrot.slane %v381_v56, 1  ;;  %v387_v59 = vrot.slane %v377_v55, 1  ;;  %v402_v60 = vrot.slane %v381_v56, 3  ;;  %v403_v61 = vrot.slane %v377_v55, 3 }
 0x14f   : > { %v394_v63 = vrot.slane %v381_v56, 2  ;;  %v395_v0 = vrot.slane %v377_v55, 2  ;;  %v405_v1 = vrot.slane %v382_v52, 3  ;;  %v397_v2 = vrot.slane %v382_v52, 2 }
 0x150   : > { %v388_v3 = vsel %vm385_vm3, %v386_v58, %v387_v59  ;;  %v404_v4 = vsel %vm401_vm4, %v402_v60, %v403_v61  ;;  %v390_v5 = vsel %vm385_vm3, %v387_v59, %v389_v57  ;;  %v409_v6 = vrot.slane %v381_v56, 4 }
 0x151   : > { %567 = vmatprep.mubr.f32.mxu1 %v388_v3  ;;  %642 = vmatprep.mubr.f32.mxu0 %v404_v4  ;;  %v396_v7 = vsel %vm393_vm5, %v394_v63, %v395_v0  ;;  %v406_v8 = vsel %vm401_vm4, %v403_v61, %v405_v1  ;;  %v398_v9 = vsel %vm393_vm5, %v395_v0, %v397_v2  ;;  %v410_v10 = vrot.slane %v377_v55, 4 }
 0x152   : > { %855 = vmatmul.mubr.msk.f32.vlgmr.msra.gmra.mrb[0].mxu1 %vm1579_vm6, %v375_v51  ;;  %643 = vmatmul.mubr.f32.vlgmr.msra.gmra.mrb[2].mxu0 %v396_v7 }
 0x153   : > { %1077 = vmatpush3.bf16.msra.mxu1 %v1074_v40  ;;  %572 = vmatprep.mubr.f32.mxu1 %v390_v5  ;;  %v411_v13 = vsel %vm291_vm1, %v409_v6, %v410_v10  ;;  %v413_v14 = vsel %vm291_vm1, %v410_v10, %v412_v54 }
 0x154   : > { %647 = vmatprep.mubr.f32.mxu0 %v406_v8  ;;  %1079 = vmatprep.subr.bf16.mxu1 %v1078_v53 }
 0x156   : > { %573 = vmatmul.mubr.f32.gmra.mrb[2].mxu1 %v377_v55  ;;  %648 = vmatmul.mubr.f32.gmra.mrb[4].mxu0 %v398_v9 }
 0x157   : > { %1081 = vmatpush3.bf16.msra.mxu1 %v1078_v53  ;;  %1003 = vmatprep.mubr.f32.mxu1 %v411_v13 }
 0x158   : > { %1083 = vmatprep.subr.bf16.mxu1 %v1082_v15 }
 0x15b   : > { %1085 = vmatpush3.bf16.msra.mxu1 %v1082_v15 }
 0x15c   : > { %1087 = vmatprep.subr.bf16.mxu1 %v1086_v18 }
 0x15f   : > { %1089 = vmatpush3.bf16.msra.mxu1 %v1086_v18 }
 0x160   : > { %1091 = vmatprep.subr.bf16.mxu1 %v1090_v21 }
 0x163   : > { %1093 = vmatpush3.bf16.msra.mxu1 %v1090_v21 }
 0x164   : > { %1095 = vmatprep.subr.bf16.mxu1 %v1094_v24 }
 0x167   : > { %1097 = vmatpush3.bf16.msra.mxu1 %v1094_v24 }
 0x168   : > { %1099 = vmatprep.subr.bf16.mxu1 %v1098_v27 }
 0x16b   : > { %1101 = vmatpush3.bf16.msra.mxu1 %v1098_v27 }
 0x16c   : > { %1103 = vmatprep.subr.bf16.mxu1 %v1102_v30 }
 0x16f   : > { %1105 = vmatpush3.bf16.msra.mxu1 %v1102_v30 }
 0x172   : > { %1004 = vmatmul.mubr.f32.vlgmr.msra.gmra.mrb[4].mxu1 %v413_v14 }
 0x225   : > { %v900_v31 = vpop.f32.mrb[0].mxu1  ;;  %v938_v32 = vpop.f32.mrb[2].mxu0 }
 0x226   : > { %v901_v34 = vpop.f32.mrb[1].mxu1  ;;  %v939_v35 = vpop.f32.mrb[3].mxu0 }
 0x227   : > { %v902_v36 = vadd.f32 %v901_v34, %v900_v31  ;;  %v940_v37 = vadd.f32 %v939_v35, %v938_v32 }
 0x229   : > { %v570_v38 = vadd.f32 %v902_v36, %v853_v33  ;;  %v903_v39 = vpop.f32.mrb[2].mxu1  ;;  %v941_v40 = vpop.f32.mrb[4].mxu0 }
 0x22a   : > { %v904_v41 = vpop.f32.mrb[3].mxu1  ;;  %v942_v42 = vpop.f32.mrb[5].mxu0 }
 0x22b   : > { %v905_v43 = vadd.f32 %v904_v41, %v903_v39  ;;  %v943_v44 = vadd.f32 %v942_v42, %v941_v40  ;;  %v645_v45 = vadd.f32 %v940_v37, %v570_v38 }
 0x22d   : > { %v575_v46 = vadd.f32 %v905_v43, %v853_v33 }
 0x22f   : > { %v650_v47 = vadd.f32 %v943_v44, %v575_v46 }
 0x245   : > { %v1005_v48 = vpop.f32.mrb[4].mxu1 }
 0x246   : > { %v725_v49 = vadd.f32 %v1005_v48, %v650_v47  ;;  %v719_v50 = vpop.f32.mrb[5].mxu1 }
 0x247   : > { %v720_v51 = vadd.f32 %v719_v50, %v645_v45 }
 0x248   : > { %729 = vst [vmem:[%s271_s10 + $0x8] sm:$0xff] %v725_v49 }
 0x249   : > { %728 = vst [vmem:[%s271_s10] sm:$0xff] %v720_v51 }
 0x24a   : > { %1276 = shalt.err (!%p1273_p1)
}
 0x24b   : > { %s1277_s12 = scalar_lea.hbm %s1604_s11, 256  ;;  %s1281_s15 = scalar_lea.hbm %s1653_s5, 512 }
 0x24c   : > { %p1278_p13 = scmp.ne.s32.totalorder %s1604_s11, %s1277_s12  ;;  %p1282_p4 = scmp.lt.u32.totalorder %s1604_s11, %s1653_s5 }
 0x24d   : > { %p1283_p5 = scmp.lt.u32.totalorder %s1281_s15, %s1277_s12  ;;  %p1285_p11 = scmp.lt.u32.totalorder %s1277_s12, %s1604_s11 }
 0x24e   : > { %p1279_p6 = pnand %p1278_p13, %p1669_p0 }
 0x24f   : > { %p1284_p8 = por %p1283_p5, %p1282_p4 }
 0x250   : > { %p1280_p10 = pneg %p1279_p6 }
 0x251   : > { %p1286_p2 = por %p1285_p11, %p1284_p8 }
 0x253   : > { %p1287_p3 = pnand %p1286_p2, %p1280_p10 }
 0x255   : > { %1290 = shalt.err (!%p1287_p3)
}
 0x256   : > { %s1341_s13 = smov 128   ;;  %s1342_s9 = smov 8  }
 0x257   : > { %1116 = dma.vmem_to_hbm [thread:$0]  (%p1669_p0), %s1599_s28, 256, %s1604_s11, %s731_s17, %s1341_s13, %s1341_s13, %s1342_s9  }
 0x258 PF: > { %s759_s30 = sand.u32 1, %s1321_s18   ;;  %p1670_p7 = scmp.ne.s32.totalorder %s1658_s25, 0 }
 0x259   : > { %p1671_p9 = scmp.ge.s32.totalorder %s1333_s21, 2  ;;  %s760_s7 = scalar_lea.sflag [#allocation4], %s759_s30 }
 0x25b   : > { %p1130_p12 = pnand %p1671_p9, %p1670_p7 }
 0x25d   : > { %1316 = dma.done.wait (!%p1130_p12), %s760_s7, 256  }
 0x25e   : > { %1318 = vsyncadd (!%p1130_p12), %s760_s7, 4294967040  ;;  %p19_p1 = scmp.ge.s32.totalorder %s1489_s29, 4   ;;  %s1672_s18 = smov %s1325_s19 }
 0x25f   : > { %s1673_s19 = smov %s1329_s20  ;;  %s1674_s20 = smov %s1505_s27 }
 0x260   : > { %s1675_s21 = smov %s1489_s29  ;;  %21 = sbr.rel (!%p19_p1) target bundleno = 6 (0x6), region = 93 }
 0x267   :  { %765 = vsyncpa [#allocation3], 1 }
 0x268   :  { %767 = vsyncpa [#allocation3 + $0x1], 1 }
 0x269   :  { %768 = vsyncpa [#allocation6], 1 }
 0x26a   :  { %769 = vsyncpa [#allocation4], 1 }
 0x26b   :  { %771 = vsyncpa [#allocation4 + $0x1], 1 }

</bundles_post_ra>
